<compile_context>
chip_gen: v6e
topology: v6e:2x2x1
jax: 0.10.0
libtpu: 0.0.40
codegen_flags: <defaults>
</compile_context>

<pallas_src>
import functools

import jax
import jax.numpy as jnp
from jax import lax
from jax.experimental import pallas as pl
from jax.experimental.pallas import tpu as pltpu

# Deterministic "config" parameters (cfg.maxh, cfg.base_freq).
MAXH = 8.0
BASE_FREQ = 0.025

_LANES = 128
_SUBLANES = 8
_MAX_TILE_ROWS = 4096     # (4096, 128) f32 = 2 MiB per streamed block.


def _round_up(x: int, m: int) -> int:
    return ((x + m - 1) // m) * m


def _detect_num_tensorcores() -> int:
    """2 on multi-TensorCore parts (v4 / v5p / v7x), else 1 (v5e / v6e)."""
    try:
        kind = jax.devices()[0].device_kind.lower()
    except Exception:
        return 1
    for tag in ("v7", "v5p", "v4"):
        if tag in kind:
            return 2
    return 1


def _exph_loss_kernel(p_ref, t_ref, acc_ref, h_ref, *, maxh, f0, batch,
                      n_tiles, tile_rows, need_mask):
    c = pl.program_id(0)
    i = pl.program_id(1)

    @pl.when(i == 0)
    def _():
        acc_ref[...] = jnp.zeros_like(acc_ref)

    y = p_ref[...].astype(jnp.float32)   # product  (tile_rows, 128)
    t = t_ref[...].astype(jnp.float32)   # target   (tile_rows, 128)

    gt = y > t
    r1 = jnp.round(y / t)                # harmonic candidate      (y > t)
    r2 = jnp.round(t / y)                # sub-harmonic candidate  (y <= t)
    rh = jnp.where(gt, r1, 1.0 / r2)

    # Original: valid = (round(1/rh) <= maxh) & (rh <= maxh) & (rh > 0)
    #   y > t : rh = round(y/t) >= 1  =>  round(1/rh) <= 1 <= maxh  (always true)
    #   y <= t: 1/rh == round(t/y) == r2  (already computed, no extra divide/round)
    valid = jnp.logical_and(rh <= maxh, jnp.logical_or(gt, r2 <= maxh))
    valid = jnp.logical_and(valid, rh > 0.0)

    h = jnp.where(valid, rh, jnp.ones_like(rh))
    h_ref[...] = h.astype(h_ref.dtype)

    elems = jnp.abs(jnp.log2((y + f0) / (h * t + f0)))

    if need_mask:
        # Mask elements whose (static-B) global index falls beyond the batch:
        # covers garbage rows of a partial last tile and redundant clamped
        # tiles on the last core.  Pure VALU; negligible vs. the HBM stream.
        start_row = (c * n_tiles + i) * tile_rows
        row = lax.broadcasted_iota(jnp.int32, elems.shape, 0)
        col = lax.broadcasted_iota(jnp.int32, elems.shape, 1)
        gidx = (start_row + row) * _LANES + col
        elems = jnp.where(gidx < batch, elems, 0.0)

    # Fold the tile onto 8 sublanes with a leading-dim split (pure VALU adds,
    # no XLU); the (8,128)-per-core accumulator stays resident across tiles.
    acc_ref[...] += elems.reshape(tile_rows // _SUBLANES, _SUBLANES, _LANES).sum(axis=0)


def exph_loss(product, target, *, maxh=MAXH, f0=BASE_FREQ,
              max_tile_rows=_MAX_TILE_ROWS, num_cores=None):
    """product, target: float arrays of identical size B (any B > 0).

    Returns (loss, h_padded) where h_padded has shape (ceil(B/128) rounded to
    8, 128); the consumer can take h_padded.reshape(-1)[:B] if it needs the
    flat per-element harmonics (kept out of this wrapper to avoid an extra
    full-array HBM pass).
    """
    product = jnp.asarray(product).reshape(-1)
    target = jnp.asarray(target).reshape(-1)
    assert product.shape == target.shape
    B = int(product.shape[0])
    assert B > 0

    if num_cores is None:
        num_cores = _detect_num_tensorcores()
    max_tile_rows = _round_up(max(int(max_tile_rows), _SUBLANES), _SUBLANES)

    # Minimal padding: only to the next 8x128 multiple, and only if needed.
    # Padded elements are 1.0 (h = 1, |log2(1)| = 0 -> zero loss contribution).
    b_pad = _round_up(B, _SUBLANES * _LANES)
    if b_pad != B:
        pad = b_pad - B
        product_p = jnp.pad(product, (0, pad), constant_values=1.0)
        target_p = jnp.pad(target, (0, pad), constant_values=1.0)
    else:
        product_p, target_p = product, target
    rows = b_pad // _LANES                       # multiple of 8

    p2 = product_p.reshape(rows, _LANES)         # free bitcast
    t2 = target_p.reshape(rows, _LANES)

    # Tiling: split rows across cores first, then cap by the VMEM budget.
    rows_per_core = -(-rows // num_cores)
    tile_rows = min(max_tile_rows, _round_up(rows_per_core, _SUBLANES))
    total_tiles = -(-rows // tile_rows)
    num_cores = min(num_cores, total_tiles)
    n_tiles = -(-total_tiles // num_cores)       # tiles per core
    need_mask = (num_cores * n_tiles * tile_rows != rows)

    kernel = functools.partial(
        _exph_loss_kernel, maxh=float(maxh), f0=float(f0), batch=B,
        n_tiles=n_tiles, tile_rows=tile_rows, need_mask=need_mask)

    # Clamp the streamed block index so redundant iterations of the last core
    # (when tiles don't split evenly) re-read the last valid tile; their loss
    # contribution is fully masked and their h store rewrites identical data.
    def io_map(c, i):
        return (jnp.minimum(c * n_tiles + i, total_tiles - 1), 0)

    acc_map = lambda c, i: (c, 0)                # per-core resident accumulator

    acc, h2 = pl.pallas_call(
        kernel,
        grid=(num_cores, n_tiles),
        in_specs=[
            pl.BlockSpec((tile_rows, _LANES), io_map),
            pl.BlockSpec((tile_rows, _LANES), io_map),
        ],
        out_specs=(
            pl.BlockSpec((_SUBLANES, _LANES), acc_map),
            pl.BlockSpec((tile_rows, _LANES), io_map),
        ),
        out_shape=(
            jax.ShapeDtypeStruct((num_cores * _SUBLANES, _LANES), jnp.float32),
            jax.ShapeDtypeStruct((rows, _LANES), product.dtype),
        ),
        compiler_params=pltpu.CompilerParams(
            dimension_semantics=("parallel", "arbitrary"),
            vmem_limit_bytes=32 * 1024 * 1024,
        ),
    )(p2, t2)

    # Tiny final reduction (num_cores*8 x 128) + divide by the true count.
    loss = jnp.sum(acc) / jnp.float32(B)
    return loss, h2


def _reference(product, target, maxh=MAXH, f0=BASE_FREQ):
    # Direct transcription of the PyTorch module (original, unsimplified formula).
    y = product.astype(jnp.float32)
    t = target.astype(jnp.float32)
    rh = jnp.where(y > t, jnp.round(y / t), 1.0 / jnp.round(t / y))
    valid = jnp.logical_and(jnp.round(1.0 / rh) <= maxh, rh <= maxh)
    valid = jnp.logical_and(valid, rh > 0.0)
    h = jnp.where(valid, rh, jnp.ones_like(rh))
    return jnp.mean(jnp.abs(jnp.log2((y + f0) / (h * t + f0)))), h


def _make_inputs(key, B):
    k1, k2, k3 = jax.random.split(key, 3)
    # Targets: positive "frequencies"; products: targets at (noisy) harmonics.
    target = jax.random.uniform(k1, (B,), jnp.float32, minval=0.2, maxval=2.0)
    harm = jnp.round(jax.random.uniform(k2, (B,), jnp.float32, minval=0.5, maxval=4.5))
    noise = 1.0 + 0.05 * jax.random.normal(k3, (B,), jnp.float32)
    product = target * harm * noise
    return product, target


if __name__ == "__main__":
    key = jax.random.PRNGKey(0)

    # Case 1: B not a multiple of 128 (exercises the minimal 1024-pad path).
    B1 = 1000
    product, target = _make_inputs(key, B1)
    loss, h_pad = exph_loss(product, target)
    jax.block_until_ready((loss, h_pad))
    ref_loss, ref_h = _reference(product, target)
    h = h_pad.reshape(-1)[:B1]            # consumer-side indexing of padded h
    assert jnp.allclose(loss, ref_loss, rtol=1e-5, atol=1e-6), (loss, ref_loss)
    assert jnp.allclose(h, ref_h, rtol=1e-5, atol=1e-6)

    # Case 2: small max_tile_rows forces a multi-tile streaming loop
    # (exercises the pl.when-init (8,128) accumulator across the "arbitrary" axis).
    B2 = 4096
    product2, target2 = _make_inputs(jax.random.PRNGKey(1), B2)
    loss2, h_pad2 = exph_loss(product2, target2, max_tile_rows=8)
    jax.block_until_ready((loss2, h_pad2))
    ref_loss2, ref_h2 = _reference(product2, target2)
    h2 = h_pad2.reshape(-1)[:B2]
    assert jnp.allclose(loss2, ref_loss2, rtol=1e-5, atol=1e-6), (loss2, ref_loss2)
    assert jnp.allclose(h2, ref_h2, rtol=1e-5, atol=1e-6)

    # Case 3: explicit 2-core grid (what a v7x / v4 / v5p device would use),
    # including uneven tiles -> clamped redundant tile + in-kernel masking.
    B3 = 3000
    product3, target3 = _make_inputs(jax.random.PRNGKey(2), B3)
    loss3, h_pad3 = exph_loss(product3, target3, max_tile_rows=8, num_cores=2)
    jax.block_until_ready((loss3, h_pad3))
    ref_loss3, ref_h3 = _reference(product3, target3)
    h3 = h_pad3.reshape(-1)[:B3]
    assert jnp.allclose(loss3, ref_loss3, rtol=1e-5, atol=1e-6), (loss3, ref_loss3)
    assert jnp.allclose(h3, ref_h3, rtol=1e-5, atol=1e-6)

    print("KERNEL_OK")
</pallas_src>

<mosaic_0001>
module attributes {stable_mosaic.version = 11 : i64} {
  func.func @_exph_loss_kernel(%arg0: i32, %arg1: i32, %arg2: memref<8x128xf32, #tpu.memory_space<vmem>>, %arg3: memref<8x128xf32, #tpu.memory_space<vmem>>, %arg4: memref<8x128xf32, #tpu.memory_space<vmem>>, %arg5: memref<8x128xf32, #tpu.memory_space<vmem>>) attributes {dimension_semantics = [#tpu.dimension_semantics<parallel>, #tpu.dimension_semantics<arbitrary>], iteration_bounds = array<i64: 1, 1>, scalar_prefetch = 0 : i64, scratch_operands = 0 : i64, tpu.core_type = #tpu.core_type<tc>, window_params = [{transform_indices = @transform_0, window_bounds = array<i64: 8, 128>}, {transform_indices = @transform_1, window_bounds = array<i64: 8, 128>}, {transform_indices = @transform_2, window_bounds = array<i64: 8, 128>}, {transform_indices = @transform_3, window_bounds = array<i64: 8, 128>}]} {
    %c0_i32 = arith.constant 0 : i32
    %0 = arith.cmpi eq, %arg1, %c0_i32 : i32
    %1 = arith.extui %0 : i1 to i32
    %c0_i32_0 = arith.constant 0 : i32
    %2 = arith.cmpi ne, %1, %c0_i32_0 : i32
    scf.if %2 {
      %cst_18 = arith.constant 0.000000e+00 : f32
      %41 = vector.broadcast %cst_18 : f32 to vector<8x128xf32>
      %c0_19 = arith.constant 0 : index
      %c0_20 = arith.constant 0 : index
      %42 = vector.load %arg4[%c0_19, %c0_20] : memref<8x128xf32, #tpu.memory_space<vmem>>, vector<8x128xf32>
      tpu.vector_store %arg4[%c0_19, %c0_20], %41 {strides = array<i32>} : memref<8x128xf32, #tpu.memory_space<vmem>>, vector<8x128xf32>,
    } else {
    }
    %c0 = arith.constant 0 : index
    %c0_1 = arith.constant 0 : index
    %3 = vector.load %arg2[%c0, %c0_1] : memref<8x128xf32, #tpu.memory_space<vmem>>, vector<8x128xf32>
    %c0_2 = arith.constant 0 : index
    %c0_3 = arith.constant 0 : index
    %4 = vector.load %arg3[%c0_2, %c0_3] : memref<8x128xf32, #tpu.memory_space<vmem>>, vector<8x128xf32>
    %5 = arith.cmpf ogt, %3, %4 : vector<8x128xf32>
    %6 = arith.divf %3, %4 : vector<8x128xf32>
    %7 = math.roundeven %6 : vector<8x128xf32>
    %8 = arith.divf %4, %3 : vector<8x128xf32>
    %9 = math.roundeven %8 : vector<8x128xf32>
    %cst = arith.constant 1.000000e+00 : f32
    %10 = vector.broadcast %cst : f32 to vector<8x128xf32>
    %11 = arith.divf %10, %9 : vector<8x128xf32>
    %12 = arith.select %5, %7, %11 : vector<8x128xi1>, vector<8x128xf32>
    %cst_4 = arith.constant 8.000000e+00 : f32
    %13 = vector.broadcast %cst_4 : f32 to vector<8x128xf32>
    %14 = arith.cmpf ole, %12, %13 : vector<8x128xf32>
    %cst_5 = arith.constant 8.000000e+00 : f32
    %15 = vector.broadcast %cst_5 : f32 to vector<8x128xf32>
    %16 = arith.cmpf ole, %9, %15 : vector<8x128xf32>
    %17 = arith.ori %5, %16 : vector<8x128xi1>
    %18 = arith.andi %14, %17 : vector<8x128xi1>
    %cst_6 = arith.constant 0.000000e+00 : f32
    %19 = vector.broadcast %cst_6 : f32 to vector<8x128xf32>
    %20 = arith.cmpf ogt, %12, %19 : vector<8x128xf32>
    %21 = arith.andi %18, %20 : vector<8x128xi1>
    %cst_7 = arith.constant 1.000000e+00 : f32
    %22 = vector.broadcast %cst_7 : f32 to vector<8x128xf32>
    %23 = arith.select %21, %12, %22 : vector<8x128xi1>, vector<8x128xf32>
    %c0_8 = arith.constant 0 : index
    %c0_9 = arith.constant 0 : index
    %24 = vector.load %arg5[%c0_8, %c0_9] : memref<8x128xf32, #tpu.memory_space<vmem>>, vector<8x128xf32>
    tpu.vector_store %arg5[%c0_8, %c0_9], %23 {strides = array<i32>} : memref<8x128xf32, #tpu.memory_space<vmem>>, vector<8x128xf32>,
    %cst_10 = arith.constant 2.500000e-02 : f32
    %25 = vector.broadcast %cst_10 : f32 to vector<8x128xf32>
    %26 = arith.addf %3, %25 : vector<8x128xf32>
    %27 = arith.mulf %23, %4 : vector<8x128xf32>
    %cst_11 = arith.constant 2.500000e-02 : f32
    %28 = vector.broadcast %cst_11 : f32 to vector<8x128xf32>
    %29 = arith.addf %27, %28 : vector<8x128xf32>
    %30 = arith.divf %26, %29 : vector<8x128xf32>
    %31 = math.log %30 : vector<8x128xf32>
    %cst_12 = arith.constant 2.000000e+00 : f32
    %32 = math.log %cst_12 : f32
    %33 = vector.broadcast %32 : f32 to vector<8x128xf32>
    %34 = arith.divf %31, %33 : vector<8x128xf32>
    %35 = math.absf %34 : vector<8x128xf32>
    %c0_13 = arith.constant 0 : index
    %c0_14 = arith.constant 0 : index
    %36 = vector.load %arg4[%c0_13, %c0_14] : memref<8x128xf32, #tpu.memory_space<vmem>>, vector<8x128xf32>
    %37 = vector.shape_cast %35 : vector<8x128xf32> to vector<1x8x128xf32>
    %cst_15 = arith.constant dense<0.000000e+00> : vector<8x128xf32>
    %38 = vector.multi_reduction <add>, %37, %cst_15 [0] : vector<1x8x128xf32> to vector<8x128xf32>
    %39 = arith.addf %36, %38 : vector<8x128xf32>
    %c0_16 = arith.constant 0 : index
    %c0_17 = arith.constant 0 : index
    %40 = vector.load %arg4[%c0_16, %c0_17] : memref<8x128xf32, #tpu.memory_space<vmem>>, vector<8x128xf32>
    tpu.vector_store %arg4[%c0_16, %c0_17], %39 {strides = array<i32>} : memref<8x128xf32, #tpu.memory_space<vmem>>, vector<8x128xf32>,
    return
  }
  func.func @transform_0(%arg0: i32, %arg1: i32) -> (i32, i32) {
    %c1_i32 = arith.constant 1 : i32
    %0 = arith.muli %arg0, %c1_i32 : i32
    %1 = arith.addi %0, %arg1 : i32
    %c0_i32 = arith.constant 0 : i32
    %2 = arith.minsi %1, %c0_i32 : i32
    %c0_i32_0 = arith.constant 0 : i32
    %c0_i32_1 = arith.constant 0 : i32
    return %2, %c0_i32_0 : i32, i32
  }
  func.func @transform_1(%arg0: i32, %arg1: i32) -> (i32, i32) {
    %c1_i32 = arith.constant 1 : i32
    %0 = arith.muli %arg0, %c1_i32 : i32
    %1 = arith.addi %0, %arg1 : i32
    %c0_i32 = arith.constant 0 : i32
    %2 = arith.minsi %1, %c0_i32 : i32
    %c0_i32_0 = arith.constant 0 : i32
    %c0_i32_1 = arith.constant 0 : i32
    return %2, %c0_i32_0 : i32, i32
  }
  func.func @transform_2(%arg0: i32, %arg1: i32) -> (i32, i32) {
    %c0_i32 = arith.constant 0 : i32
    %c0_i32_0 = arith.constant 0 : i32
    return %arg0, %c0_i32 : i32, i32
  }
  func.func @transform_3(%arg0: i32, %arg1: i32) -> (i32, i32) {
    %c1_i32 = arith.constant 1 : i32
    %0 = arith.muli %arg0, %c1_i32 : i32
    %1 = arith.addi %0, %arg1 : i32
    %c0_i32 = arith.constant 0 : i32
    %2 = arith.minsi %1, %c0_i32 : i32
    %c0_i32_0 = arith.constant 0 : i32
    %c0_i32_1 = arith.constant 0 : i32
    return %2, %c0_i32_0 : i32, i32
  }
}

</mosaic_0001>

<bundles_post_ra>
// kernel: tpu_custom_call.1
= control target key start
LH: loop header
LB: loop body
LE: loop exit
PB: predicated region body
PF: predicated region fallthrough
CT: control target
= control target key end

     0   :  { %9 = vsyncpa [#allocation3], 0  ;;  %s293_s0 = inlined_call_operand.hbm [shape: f32[8,128], index: 0, kind: input, shape index: {}]   ;;  %s294_s1 = inlined_call_operand.hbm [shape: f32[8,128], index: 1, kind: input, shape index: {}]   ;;  %s295_s2 = inlined_call_operand.hbm [shape: f32[8,128], index: 2, kind: output, shape index: {0}]   ;;  %s296_s3 = inlined_call_operand.hbm [shape: f32[8,128], index: 3, kind: output, shape index: {1}]  }
   0x1   :  { %10 = vsyncpa [#allocation6], 0 }
   0x2   :  { %11 = vsyncpa [#allocation4], 0 }
   0x3   :  { %12 = vsyncpa [#allocation9], 0  ;;  %s257_s12 = smov [#allocation2]   ;;  %s258_s14 = smov [#allocation5]  }
   0x4   :  { %s24_s13 = sshll.u32 %s257_s12, 4  ;;  %s39_s15 = sshll.u32 %s258_s14, 4  ;;  %s25_s13 = int_to_ptr.vmem [resolvable:$true] %s24_s13  ;;  %s40_s15 = int_to_ptr.vmem [resolvable:$true] %s39_s15 }
   0x5   :  { %s177_s16 = scalar_lea.vmem %s25_s13, 128  ;;  %p182_p1 = scmp.lt.s32.totalorder %s25_s13, %s25_s13 }
   0x6   :  { %p178_p0 = scmp.ne.s32.totalorder %s25_s13, %s177_s16  ;;  %p183_p2 = scmp.lt.s32.totalorder %s177_s16, %s177_s16 }
   0x8   :  { %p184_p3 = por %p183_p2, %p182_p1 }
   0xa   :  { %p185_p4 = pnand %p184_p3, %p178_p0 }
   0xc   :  { %188 = shalt.err (!%p185_p4)
}
   0xd   :  { %27 = dma.hbm_to_vmem [thread:$0]  %s293_s0, 128, %s25_s13, [#allocation3]  }
   0xe   :  { %s197_s19 = scalar_lea.vmem %s40_s15, 128  ;;  %p202_p6 = scmp.lt.s32.totalorder %s40_s15, %s40_s15 }
   0xf   :  { %p198_p5 = scmp.ne.s32.totalorder %s40_s15, %s197_s19  ;;  %p203_p7 = scmp.lt.s32.totalorder %s197_s19, %s197_s19 }
  0x11   :  { %p204_p8 = por %p203_p7, %p202_p6 }
  0x13   :  { %p205_p9 = pnand %p204_p8, %p198_p5 }
  0x15   :  { %208 = shalt.err (!%p205_p9)
}
  0x16   :  { %42 = dma.hbm_to_vmem [thread:$0]  %s294_s1, 128, %s40_s15, [#allocation6]  }
  0x17   :  { %249 = dma.done.wait [#allocation3], 128  }
  0x18   :  { %250 = vsyncadd [#allocation3], 4294967168 }
  0x19   :  { %251 = dma.done.wait [#allocation6], 128  }
  0x1a   :  { %252 = vsyncadd [#allocation6], 4294967168  ;;  %v63_v0 = vld [vmem:[#allocation2] sm:$0xff]  ;;  %v64_v1 = vld [vmem:[#allocation5] sm:$0xff]  ;;  %s259_s0 = smov [#allocation8]  }
  0x1b   :  { %159 = vrcp.f32 %v64_v1  ;;  %vm65_vm2 = vcmp.gt.f32.partialorder %v63_v0, %v64_v1  ;;  %s118_s1 = sshll.u32 %s259_s0, 4  ;;  %s119_s1 = int_to_ptr.vmem [resolvable:$true] %s118_s1 }
  0x1c   :  { %161 = vrcp.f32 %v63_v0  ;;  %s209_s22 = scalar_lea.vmem %s119_s1, 128  ;;  %p214_p11 = scmp.lt.s32.totalorder %s119_s1, %s119_s1 }
  0x1d   :  { %p210_p10 = scmp.ne.s32.totalorder %s119_s1, %s209_s22  ;;  %p215_p12 = scmp.lt.s32.totalorder %s209_s22, %s209_s22 }
  0x1f   :  { %p216_p13 = por %p215_p12, %p214_p11 }
  0x21   :  { %p217_p0 = pnand %p216_p13, %p210_p10 }
  0x28   :  { %v160_v2 = vpop.eup %159 }
  0x29   :  { %v162_v3 = vpop.eup %161  ;;  %v67_v5 = vmul.f32 %v160_v2, %v63_v0 }
  0x2a   :  { %v70_v4 = vmul.f32 %v162_v3, %v64_v1 }
  0x2b   :  { %v140_v10 = vcvt.f32.s32 %v67_v5  ;;  %v143_v16 = vand.u32 2147483648, %v67_v5  ;;  %v138_v17 = vand.u32 2147483647, %v67_v5 }
  0x2c   :  { %v148_v6 = vcvt.f32.s32 %v70_v4  ;;  %v146_v7 = vand.u32 2147483647, %v70_v4  ;;  %v151_v9 = vand.u32 2147483648, %v70_v4 }
  0x2d   :  { %v141_v13 = vcvt.s32.f32 %v140_v10  ;;  %vm139_vm1 = vcmp.lt.f32.partialorder %v138_v17, 8388608.0 }
  0x2e   :  { %v149_v8 = vcvt.s32.f32 %v148_v6  ;;  %vm147_vm0 = vcmp.lt.f32.partialorder %v146_v7, 8388608.0 }
  0x2f   :  { %v142_v15 = vand.u32 2147483647, %v141_v13 }
  0x30   :  { %v150_v11 = vand.u32 2147483647, %v149_v8 }
  0x31   :  { %v144_v18 = vor.u32 %v143_v16, %v142_v15 }
  0x32   :  { %v152_v12 = vor.u32 %v151_v9, %v150_v11 }
  0x33   :  { %v145_v19 = vsel %vm139_vm1, %v144_v18, %v67_v5 }
  0x34   :  { %v153_v14 = vsel %vm147_vm0, %v152_v12, %v70_v4 }
  0x35   :  { %163 = vrcp.f32 %v153_v14  ;;  %vm76_vm3 = vcmp.le.f32.partialorder %v153_v14, 8.0 }
  0x36   :  { %vm77_vm4 = vmor %vm65_vm2, %vm76_vm3 }
  0x42   :  { %v164_v20 = vpop.eup %163 }
  0x43   :  { %v74_v21 = vsel %vm65_vm2, %v145_v19, %v164_v20 }
  0x44   :  { %vm75_vm5 = vcmp.le.f32.partialorder %v74_v21, 8.0  ;;  %vm79_vm6 = vcmp.gt.f32.partialorder %v74_v21, 0.0 }
  0x45   :  { %vm78_vm7 = vmand %vm75_vm5, %vm77_vm4 }
  0x46   :  { %vm80_vm8 = vmand %vm78_vm7, %vm79_vm6 }
  0x47   :  { %v81_v22 = vsel %vm80_vm8, %v74_v21, 1.0 }
  0x48   :  { %82 = vst [vmem:[#allocation8] sm:$0xff] %v81_v22  ;;  %v84_v23 = vmul.f32 %v81_v22, %v64_v1 }
  0x49   :  { %220 = shalt.err (!%p217_p0)
}
  0x4a   :  { %121 = dma.vmem_to_hbm [thread:$0]  %s119_s1, 128, %s296_s3, [#allocation9]   ;;  %v85_v24 = vadd.f32 0.025, %v84_v23  ;;  %v83_v25 = vadd.f32 0.025, %v63_v0 }
  0x4b   :  { %s260_s25 = smov [#allocation7]  }
  0x4c   :  { %165 = vrcp.f32 %v85_v24  ;;  %s103_s26 = sshll.u32 %s260_s25, 4  ;;  %s104_s26 = int_to_ptr.vmem [resolvable:$true] %s103_s26 }
  0x4d   :  { %s229_s27 = scalar_lea.vmem %s104_s26, 128  ;;  %p234_p2 = scmp.lt.s32.totalorder %s104_s26, %s104_s26 }
  0x4e   :  { %p230_p1 = scmp.ne.s32.totalorder %s104_s26, %s229_s27  ;;  %p235_p3 = scmp.lt.s32.totalorder %s229_s27, %s229_s27 }
  0x50   :  { %p236_p4 = por %p235_p3, %p234_p2 }
  0x52   :  { %p237_p5 = pnand %p236_p4, %p230_p1 }
  0x59   :  { %v166_v26 = vpop.eup %165 }
  0x5a   :  { %v87_v27 = vmul.f32 %v166_v26, %v83_v25 }
  0x5c   :  { %167 = vlog2.f32 %v87_v27 }
  0x69   :  { %v168_v28 = vpop.eup %167 }
  0x6a   :  { %v89_v29 = vmul.f32 0.6931472, %v168_v28 }
  0x6c   :  { %v91_v30 = vmul.f32 1.442695, %v89_v29 }
  0x6e   :  { %v92_v31 = vand.u32 2147483647, %v91_v30 }
  0x70   :  { %96 = vst [vmem:[#allocation7] sm:$0xff] %v92_v31 }
  0x71   :  { %240 = shalt.err (!%p237_p5)
}
  0x72   :  { %106 = dma.vmem_to_hbm [thread:$0]  %s104_s26, 128, %s295_s2, [#allocation4]  }
  0x73   :  { %253 = dma.done.wait [#allocation4], 128  }
  0x74   :  { %254 = vsyncadd [#allocation4], 4294967168 }
  0x75   :  { %255 = dma.done.wait [#allocation9], 128  }
  0x76   :  { %256 = vsyncadd [#allocation9], 4294967168 }
  0x77   :  { %128 = vsyncpa [#allocation3], 1 }
  0x78   :  { %129 = vsyncpa [#allocation6], 1 }
  0x79   :  { %130 = vsyncpa [#allocation4], 1 }
  0x7a   :  { %131 = vsyncpa [#allocation9], 1 }

</bundles_post_ra>
